<compile_context>
chip_gen: v5e
topology: v5e:2x2
jax: 0.10.0
libtpu: 0.0.40
codegen_flags: <defaults>
</compile_context>

<pallas_src>
import math
from functools import partial

import jax
import jax.numpy as jnp
from jax.experimental import pallas as pl
from jax.experimental.pallas import tpu as pltpu


def _round_up(v, m):
    return ((v + m - 1) // m) * m


def _round_down(v, m):
    return (v // m) * m


def _pad_lane(v):
    return _round_up(max(int(v), 1), 128)


def _vmem_capacity_bytes():
    """Per-core VMEM capacity (128 MiB on v5e/v6e, 64 MiB on v7x)."""
    try:
        info = pltpu.get_tpu_info()
        cap = getattr(info, "vmem_capacity_bytes", None)
        if cap:
            return int(cap)
    except Exception:
        pass
    return 64 * 1024 * 1024            # conservative default (v7x-sized)


def _mxu_rows():
    """Native MXU row granularity: 128 on <=v5, 256 on v6e/v7x."""
    try:
        kind = jax.devices()[0].device_kind.lower()
        if any(t in kind for t in ("v2", "v3", "v4", "v5")):
            return 128
    except Exception:
        pass
    return 256


def _sublane_pack(itemsize):
    """Rows per packed sublane group: 8 for f32, 16 for bf16, 32 for int8."""
    return 8 * max(4 // max(int(itemsize), 1), 1)


def _choose_tb(b_rows, per_row_bytes, fixed_bytes, budget, pack_rows, mxu_rows):
    """Largest B-tile fitting the VMEM budget; MXU/sublane aligned; keeps
    >=2 parallel grid steps when B is large (v7x megacore)."""
    if b_rows <= pack_rows:
        return max(int(b_rows), 1)
    avail = max(budget - fixed_bytes, per_row_bytes * pack_rows)
    tb = int(avail // max(per_row_bytes, 1))
    tb = min(tb, 2048)
    if b_rows >= 4 * mxu_rows:
        # Keep the parallel B axis at >=2 grid steps (per-core tiles stay
        # >=2*mxu_rows, so this is ~free on single-TC chips, ~2x on v7x).
        tb = min(tb, _round_up(-(-b_rows // 2), mxu_rows))
    if tb >= b_rows:
        return int(b_rows)
    if tb >= mxu_rows:
        tb = _round_down(tb, mxu_rows)
    else:
        tb = max(_round_down(tb, pack_rows), pack_rows)
    return int(tb)


def _resident_kernel(*refs, n_instances, f_in, f_out, has_bias):
    # x_ref: (TB, N*F_in)   w_ref: (N, F_in, F_out)   b_ref: (N, F_out)
    # o_ref: (TB, N*F_out)
    if has_bias:
        x_ref, w_ref, b_ref, o_ref = refs
    else:
        x_ref, w_ref, o_ref = refs
        b_ref = None
    # Per-instance slabs are read straight from the refs as static,
    # lane-contiguous slices -- no materialize-then-slice VMEM copies.
    for i in range(n_instances):
        xi = x_ref[:, i * f_in:(i + 1) * f_in]                   # (TB, F_in)
        acc = jnp.dot(xi, w_ref[i], preferred_element_type=jnp.float32)
        if has_bias:
            acc = acc + b_ref[i:i + 1, :].astype(jnp.float32)    # (1, F_out)
        o_ref[:, i * f_out:(i + 1) * f_out] = acc.astype(o_ref.dtype)


def _streamed_kernel(*refs, has_bias):
    # x_ref: (1, TB, F_in)  w_ref: (1, F_in, F_out)  b_ref: (1, 1, F_out)
    # o_ref: (1, TB, F_out)
    if has_bias:
        x_ref, w_ref, b_ref, o_ref = refs
    else:
        x_ref, w_ref, o_ref = refs
        b_ref = None
    acc = jnp.dot(x_ref[0], w_ref[0], preferred_element_type=jnp.float32)
    if has_bias:
        acc = acc + b_ref[0].astype(jnp.float32)                 # (1, F_out)
    o_ref[0] = acc.astype(o_ref.dtype)


def multi_linear(x, weight, bias=None, *, weight_streaming=None):
    """Pallas implementation of MultiLinear.forward.

    Args:
      x:      [..., N, F_in]
      weight: [N, F_in, F_out]
      bias:   [N, F_out] (or any shape with N*F_out elements) or None
      weight_streaming: force (True) / forbid (False) the streamed-weight
        path; None selects automatically from N and the VMEM budget.
    Returns:
      out:    [..., N, F_out]
    """
    n_instances, f_in, f_out = (int(d) for d in weight.shape)
    assert x.shape[-1] == f_in and x.shape[-2] == n_instances

    lead_shape = x.shape[:-2]
    B = int(math.prod(lead_shape)) if lead_shape else 1
    out_dtype = x.dtype

    x_item = jnp.dtype(x.dtype).itemsize
    w_item = jnp.dtype(weight.dtype).itemsize
    pack_rows = _sublane_pack(x_item)
    w_pack = _sublane_pack(w_item)
    mxu_rows = _mxu_rows()

    cap = _vmem_capacity_bytes()
    budget = int(cap * 0.70)           # tile-planning budget
    vmem_limit = int(cap * 0.85)       # Mosaic scoped-VMEM limit

    bias_arr = bias.reshape(n_instances, f_out) if bias is not None else None
    has_bias = bias_arr is not None

    # Resident-path footprint (weight/bias single-buffered via pl.Buffered(1)).
    resident_fixed = (
        n_instances * _round_up(f_in, w_pack) * _pad_lane(f_out) * w_item
        + _round_up(n_instances, 8) * _pad_lane(f_out) * 4)
    resident_per_row = 2 * (_pad_lane(n_instances * f_in) * x_item
                            + _pad_lane(n_instances * f_out) * x_item)

    if weight_streaming is None:
        min_rows = max(min(B, 256), pack_rows)
        weight_streaming = (
            n_instances > 64
            or resident_fixed + resident_per_row * min_rows > budget)

    flops = 2 * B * n_instances * f_in * f_out
    bytes_accessed = (B * n_instances * (f_in + f_out) * x_item
                      + n_instances * f_in * f_out * w_item
                      + (n_instances * f_out * w_item if has_bias else 0))
    cost = pl.CostEstimate(flops=flops, transcendentals=0,
                           bytes_accessed=bytes_accessed)

    if not weight_streaming:
        # ---------------------- resident-weight path -----------------------
        x2 = x.reshape(B, n_instances * f_in)          # free, contiguous
        tb = _choose_tb(B, resident_per_row, resident_fixed, budget,
                        pack_rows, mxu_rows)
        grid = (pl.cdiv(B, tb),)

        in_specs = [
            pl.BlockSpec((tb, n_instances * f_in), lambda b: (b, 0)),
            # Grid-invariant weight: constant index_map + single buffer.
            pl.BlockSpec((n_instances, f_in, f_out), lambda b: (0, 0, 0),
                         pipeline_mode=pl.Buffered(1)),
        ]
        args = [x2, weight]
        if has_bias:
            in_specs.append(pl.BlockSpec((n_instances, f_out),
                                         lambda b: (0, 0),
                                         pipeline_mode=pl.Buffered(1)))
            args.append(bias_arr)

        kernel = partial(_resident_kernel, n_instances=n_instances,
                         f_in=f_in, f_out=f_out, has_bias=has_bias)

        out2 = pl.pallas_call(
            kernel,
            out_shape=jax.ShapeDtypeStruct((B, n_instances * f_out), out_dtype),
            grid_spec=pltpu.PrefetchScalarGridSpec(
                num_scalar_prefetch=0,
                grid=grid,
                in_specs=in_specs,
                out_specs=pl.BlockSpec((tb, n_instances * f_out),
                                       lambda b: (b, 0)),
            ),
            compiler_params=pltpu.CompilerParams(
                dimension_semantics=("parallel",),
                vmem_limit_bytes=vmem_limit,
            ),
            cost_estimate=cost,
        )(*args)
        return out2.reshape(*lead_shape, n_instances, f_out)

    # ------------------------ streamed-weight path -------------------------
    # TODO(synk): if a single instance's (F_in, F_out) weight still exceeds
    # the VMEM budget, add a K-reduction grid axis + F_out tiling with an f32
    # accumulator scratch and pl.when init/finalize.
    streamed_fixed = 2 * (_round_up(f_in, w_pack) * _pad_lane(f_out) * w_item
                          + _pad_lane(f_out) * 4)
    streamed_per_row = 2 * (_pad_lane(f_in) * x_item + _pad_lane(f_out) * x_item)
    tb = _choose_tb(B, streamed_per_row, streamed_fixed, budget,
                    pack_rows, mxu_rows)
    grid = (n_instances, pl.cdiv(B, tb))

    # Instance-major layout: every block is a dense 2D matmul tile.  The one
    # transpose of x / out is negligible next to the matmul FLOPs in the
    # large-weight / large-N regime that selects this path.
    xt = jnp.swapaxes(x.reshape(B, n_instances, f_in), 0, 1)   # [N, B, F_in]

    in_specs = [
        pl.BlockSpec((1, tb, f_in), lambda n, b: (n, b, 0)),
        # Per-instance weight, double-buffered: DMA of instance n+1 overlaps
        # the matmuls of instance n; constant across the inner B sweep.
        pl.BlockSpec((1, f_in, f_out), lambda n, b: (n, 0, 0)),
    ]
    args = [xt, weight]
    if has_bias:
        in_specs.append(pl.BlockSpec((1, 1, f_out), lambda n, b: (n, 0, 0)))
        args.append(bias_arr.reshape(n_instances, 1, f_out))

    kernel = partial(_streamed_kernel, has_bias=has_bias)

    out_t = pl.pallas_call(
        kernel,
        out_shape=jax.ShapeDtypeStruct((n_instances, B, f_out), out_dtype),
        grid_spec=pltpu.PrefetchScalarGridSpec(
            num_scalar_prefetch=0,
            grid=grid,
            in_specs=in_specs,
            out_specs=pl.BlockSpec((1, tb, f_out), lambda n, b: (n, b, 0)),
        ),
        compiler_params=pltpu.CompilerParams(
            dimension_semantics=("parallel", "parallel"),
            vmem_limit_bytes=vmem_limit,
        ),
        cost_estimate=cost,
    )(*args)
    out = jnp.swapaxes(out_t, 0, 1)                            # [B, N, F_out]
    return out.reshape(*lead_shape, n_instances, f_out)


if __name__ == "__main__":
    # Small shapes consistent with the module's example (b t n f layout).
    batch, time, n_instances = 2, 8, 4
    in_channels, out_channels = 16, 32

    key = jax.random.PRNGKey(0)
    k_x, k_w, k_b = jax.random.split(key, 3)

    # Deterministic init mirroring reset_parameters():
    # uniform(-1/sqrt(in_channels), 1/sqrt(in_channels))
    bound = 1.0 / math.sqrt(in_channels)
    weight = jax.random.uniform(
        k_w, (n_instances, in_channels, out_channels),
        minval=-bound, maxval=bound, dtype=jnp.float32)
    bias = jax.random.uniform(
        k_b, (n_instances, out_channels),
        minval=-bound, maxval=bound, dtype=jnp.float32)
    x = jax.random.normal(
        k_x, (batch, time, n_instances, in_channels), dtype=jnp.float32)

    ref = jnp.einsum("btxy,xyz->btxz", x, weight) + bias[None, None, :, :]
    ref_nb = jnp.einsum("btxy,xyz->btxz", x, weight)

    # Resident-weight path (auto-selected at these sizes): bias + no-bias.
    out = jax.block_until_ready(multi_linear(x, weight, bias))
    assert out.shape == (batch, time, n_instances, out_channels), out.shape
    assert jnp.allclose(out, ref, atol=1e-5, rtol=1e-5), "resident/bias mismatch"

    out_nb = jax.block_until_ready(multi_linear(x, weight, None))
    assert jnp.allclose(out_nb, ref_nb, atol=1e-5, rtol=1e-5), "resident/no-bias mismatch"

    # Streamed-weight path (forced), used for large N / weights that don't fit.
    out_s = jax.block_until_ready(
        multi_linear(x, weight, bias, weight_streaming=True))
    assert jnp.allclose(out_s, ref, atol=1e-5, rtol=1e-5), "streamed/bias mismatch"

    print("KERNEL_OK")
</pallas_src>

<mosaic_0001>
module attributes {stable_mosaic.version = 11 : i64} {
  func.func @_resident_kernel(%arg0: i32, %arg1: memref<16x64xf32, #tpu.memory_space<vmem>>, %arg2: memref<4x16x32xf32, #tpu.memory_space<vmem>>, %arg3: memref<4x32xf32, #tpu.memory_space<vmem>>, %arg4: memref<16x128xf32, #tpu.memory_space<vmem>>) attributes {dimension_semantics = [#tpu.dimension_semantics<parallel>], iteration_bounds = array<i64: 1>, scalar_prefetch = 0 : i64, scratch_operands = 0 : i64, tpu.core_type = #tpu.core_type<tc>, window_params = [{transform_indices = @transform_0, window_bounds = array<i64: 16, 64>}, {pipeline_mode = #tpu.pipeline_mode<synchronous>, transform_indices = @transform_1, window_bounds = array<i64: 4, 16, 32>}, {pipeline_mode = #tpu.pipeline_mode<synchronous>, transform_indices = @transform_2, window_bounds = array<i64: 4, 32>}, {transform_indices = @transform_3, window_bounds = array<i64: 16, 128>}]} {
    %c0 = arith.constant 0 : index
    %c0_0 = arith.constant 0 : index
    %0 = vector.load %arg1[%c0, %c0_0] : memref<16x64xf32, #tpu.memory_space<vmem>>, vector<16x16xf32>
    %c0_1 = arith.constant 0 : index
    %c0_2 = arith.constant 0 : index
    %c0_3 = arith.constant 0 : index
    %1 = vector.load %arg2[%c0_1, %c0_2, %c0_3] : memref<4x16x32xf32, #tpu.memory_space<vmem>>, vector<1x16x32xf32>
    %2 = vector.shape_cast %1 : vector<1x16x32xf32> to vector<16x32xf32>
    %cst = arith.constant dense<0.000000e+00> : vector<16x32xf32>
    %3 = tpu.matmul %0, %2, %cst {dimension_numbers = #tpu.dot_dimension_numbers<[1], [0], [0], [1], [0, 0, 1, 1], [], []>} : vector<16x16xf32>, vector<16x32xf32>, vector<16x32xf32> -> vector<16x32xf32>
    %c0_4 = arith.constant 0 : index
    %c0_5 = arith.constant 0 : index
    %4 = vector.load %arg3[%c0_4, %c0_5] : memref<4x32xf32, #tpu.memory_space<vmem>>, vector<1x32xf32>
    %5 = vector.broadcast %4 : vector<1x32xf32> to vector<16x32xf32>
    %6 = arith.addf %3, %5 : vector<16x32xf32>
    %c0_6 = arith.constant 0 : index
    %c0_7 = arith.constant 0 : index
    %7 = vector.load %arg4[%c0_6, %c0_7] : memref<16x128xf32, #tpu.memory_space<vmem>>, vector<16x32xf32>
    tpu.vector_store %arg4[%c0_6, %c0_7], %6 {strides = array<i32>} : memref<16x128xf32, #tpu.memory_space<vmem>>, vector<16x32xf32>,
    %c0_8 = arith.constant 0 : index
    %c16 = arith.constant 16 : index
    %8 = vector.load %arg1[%c0_8, %c16] : memref<16x64xf32, #tpu.memory_space<vmem>>, vector<16x16xf32>
    %c1 = arith.constant 1 : index
    %c0_9 = arith.constant 0 : index
    %c0_10 = arith.constant 0 : index
    %9 = vector.load %arg2[%c1, %c0_9, %c0_10] : memref<4x16x32xf32, #tpu.memory_space<vmem>>, vector<1x16x32xf32>
    %10 = vector.shape_cast %9 : vector<1x16x32xf32> to vector<16x32xf32>
    %cst_11 = arith.constant dense<0.000000e+00> : vector<16x32xf32>
    %11 = tpu.matmul %8, %10, %cst_11 {dimension_numbers = #tpu.dot_dimension_numbers<[1], [0], [0], [1], [0, 0, 1, 1], [], []>} : vector<16x16xf32>, vector<16x32xf32>, vector<16x32xf32> -> vector<16x32xf32>
    %c1_12 = arith.constant 1 : index
    %c0_13 = arith.constant 0 : index
    %12 = vector.load %arg3[%c1_12, %c0_13] : memref<4x32xf32, #tpu.memory_space<vmem>>, vector<1x32xf32>
    %13 = vector.broadcast %12 : vector<1x32xf32> to vector<16x32xf32>
    %14 = arith.addf %11, %13 : vector<16x32xf32>
    %c0_14 = arith.constant 0 : index
    %c32 = arith.constant 32 : index
    %15 = vector.load %arg4[%c0_14, %c32] : memref<16x128xf32, #tpu.memory_space<vmem>>, vector<16x32xf32>
    tpu.vector_store %arg4[%c0_14, %c32], %14 {strides = array<i32>} : memref<16x128xf32, #tpu.memory_space<vmem>>, vector<16x32xf32>,
    %c0_15 = arith.constant 0 : index
    %c32_16 = arith.constant 32 : index
    %16 = vector.load %arg1[%c0_15, %c32_16] : memref<16x64xf32, #tpu.memory_space<vmem>>, vector<16x16xf32>
    %c2 = arith.constant 2 : index
    %c0_17 = arith.constant 0 : index
    %c0_18 = arith.constant 0 : index
    %17 = vector.load %arg2[%c2, %c0_17, %c0_18] : memref<4x16x32xf32, #tpu.memory_space<vmem>>, vector<1x16x32xf32>
    %18 = vector.shape_cast %17 : vector<1x16x32xf32> to vector<16x32xf32>
    %cst_19 = arith.constant dense<0.000000e+00> : vector<16x32xf32>
    %19 = tpu.matmul %16, %18, %cst_19 {dimension_numbers = #tpu.dot_dimension_numbers<[1], [0], [0], [1], [0, 0, 1, 1], [], []>} : vector<16x16xf32>, vector<16x32xf32>, vector<16x32xf32> -> vector<16x32xf32>
    %c2_20 = arith.constant 2 : index
    %c0_21 = arith.constant 0 : index
    %20 = vector.load %arg3[%c2_20, %c0_21] : memref<4x32xf32, #tpu.memory_space<vmem>>, vector<1x32xf32>
    %21 = vector.broadcast %20 : vector<1x32xf32> to vector<16x32xf32>
    %22 = arith.addf %19, %21 : vector<16x32xf32>
    %c0_22 = arith.constant 0 : index
    %c64 = arith.constant 64 : index
    %23 = vector.load %arg4[%c0_22, %c64] : memref<16x128xf32, #tpu.memory_space<vmem>>, vector<16x32xf32>
    tpu.vector_store %arg4[%c0_22, %c64], %22 {strides = array<i32>} : memref<16x128xf32, #tpu.memory_space<vmem>>, vector<16x32xf32>,
    %c0_23 = arith.constant 0 : index
    %c48 = arith.constant 48 : index
    %24 = vector.load %arg1[%c0_23, %c48] : memref<16x64xf32, #tpu.memory_space<vmem>>, vector<16x16xf32>
    %c3 = arith.constant 3 : index
    %c0_24 = arith.constant 0 : index
    %c0_25 = arith.constant 0 : index
    %25 = vector.load %arg2[%c3, %c0_24, %c0_25] : memref<4x16x32xf32, #tpu.memory_space<vmem>>, vector<1x16x32xf32>
    %26 = vector.shape_cast %25 : vector<1x16x32xf32> to vector<16x32xf32>
    %cst_26 = arith.constant dense<0.000000e+00> : vector<16x32xf32>
    %27 = tpu.matmul %24, %26, %cst_26 {dimension_numbers = #tpu.dot_dimension_numbers<[1], [0], [0], [1], [0, 0, 1, 1], [], []>} : vector<16x16xf32>, vector<16x32xf32>, vector<16x32xf32> -> vector<16x32xf32>
    %c3_27 = arith.constant 3 : index
    %c0_28 = arith.constant 0 : index
    %28 = vector.load %arg3[%c3_27, %c0_28] : memref<4x32xf32, #tpu.memory_space<vmem>>, vector<1x32xf32>
    %29 = vector.broadcast %28 : vector<1x32xf32> to vector<16x32xf32>
    %30 = arith.addf %27, %29 : vector<16x32xf32>
    %c0_29 = arith.constant 0 : index
    %c96 = arith.constant 96 : index
    %31 = vector.load %arg4[%c0_29, %c96] : memref<16x128xf32, #tpu.memory_space<vmem>>, vector<16x32xf32>
    tpu.vector_store %arg4[%c0_29, %c96], %30 {strides = array<i32>} : memref<16x128xf32, #tpu.memory_space<vmem>>, vector<16x32xf32>,
    return
  }
  func.func @transform_0(%arg0: i32) -> (i32, i32) {
    %c0_i32 = arith.constant 0 : i32
    %c0_i32_0 = arith.constant 0 : i32
    return %arg0, %c0_i32 : i32, i32
  }
  func.func @transform_1(%arg0: i32) -> (i32, i32, i32) {
    %c0_i32 = arith.constant 0 : i32
    %c0_i32_0 = arith.constant 0 : i32
    %c0_i32_1 = arith.constant 0 : i32
    %c0_i32_2 = arith.constant 0 : i32
    return %c0_i32, %c0_i32_0, %c0_i32_1 : i32, i32, i32
  }
  func.func @transform_2(%arg0: i32) -> (i32, i32) {
    %c0_i32 = arith.constant 0 : i32
    %c0_i32_0 = arith.constant 0 : i32
    %c0_i32_1 = arith.constant 0 : i32
    return %c0_i32, %c0_i32_0 : i32, i32
  }
  func.func @transform_3(%arg0: i32) -> (i32, i32) {
    %c0_i32 = arith.constant 0 : i32
    %c0_i32_0 = arith.constant 0 : i32
    return %arg0, %c0_i32 : i32, i32
  }
}

</mosaic_0001>

<bundles_post_ra>
// kernel: tpu_custom_call.1
= control target key start
LH: loop header
LB: loop body
LE: loop exit
PB: predicated region body
PF: predicated region fallthrough
CT: control target
= control target key end

     0   :  { %8 = vsyncpa [#allocation3], 0  ;;  %s453_s0 = inlined_call_operand.hbm [shape: f32[16,64], index: 0, kind: input, shape index: {}]   ;;  %s454_s1 = inlined_call_operand.hbm [shape: f32[4,16,32], index: 1, kind: input, shape index: {}]   ;;  %s455_s2 = inlined_call_operand.hbm [shape: f32[4,32], index: 2, kind: input, shape index: {}]   ;;  %s456_s3 = inlined_call_operand.hbm [shape: f32[16,128], index: 3, kind: output, shape index: {}]  }
   0x1   :  { %9 = vsyncpa [#allocation6], 0 }
   0x2   :  { %10 = vsyncpa [#allocation4], 0  ;;  %s28_s14 = sshll.u32 %s454_s1, 4  ;;  %s397_s15 = smov [#allocation5]   ;;  %s29_s14 = int_to_ptr.hbm [resolvable:$true] %s28_s14 }
   0x3   :  { %s30_s16 = sshll.u32 %s397_s15, 4  ;;  %s15_s19 = sshll.u32 %s453_s0, 4  ;;  %s31_s16 = int_to_ptr.vmem [resolvable:$true] %s30_s16  ;;  %s16_s19 = int_to_ptr.hbm [resolvable:$true] %s15_s19 }
   0x4   :  { %s398_s20 = smov 128   ;;  %s399_s21 = smov 8  }
   0x5   :  { %36 = dma.hbm_to_vmem [thread:$0]  %s29_s14, 1024, %s31_s16, [#allocation6], %s398_s20, %s398_s20, %s399_s21  }
   0x6   :  { %s400_s22 = smov [#allocation2]   ;;  %s42_s1 = sshll.u32 %s455_s2, 4  ;;  %s43_s1 = int_to_ptr.hbm [resolvable:$true] %s42_s1 }
   0x7   :  { %s17_s23 = sshll.u32 %s400_s22, 4  ;;  %s401_s0 = smov [#allocation7]   ;;  %s18_s23 = int_to_ptr.vmem [resolvable:$true] %s17_s23 }
   0x8   :  { %23 = dma.hbm_to_vmem [thread:$0]  %s16_s19, 256, %s18_s23, [#allocation3], %s398_s20, %s398_s20, %s399_s21  }
   0x9   :  { %s44_s26 = sshll.u32 %s401_s0, 4  ;;  %s45_s26 = int_to_ptr.vmem [resolvable:$true] %s44_s26 }
   0xa   :  { %47 = dma.hbm_to_vmem [thread:$0]  %s43_s1, 64, %s45_s26, [#allocation6]  }
   0xb   :  { %391 = dma.done.wait [#allocation3], 256  }
   0xc   :  { %392 = vsyncadd [#allocation3], 4294967040 }
   0xd   :  { %393 = dma.done.wait [#allocation6], 1088  }
   0xe   :  { %394 = vsyncadd [#allocation6], 4294966208  ;;  %v150_v0 = vld [vmem:[#allocation2] sm:$0xff]  ;;  %v151_v1 = vld [vmem:[#allocation2 + $0x8] sm:$0xff]  ;;  %s402_s27 = smov 96   ;;  %s403_s2 = smov 112  }
   0xf   :  { %v103_v2 = vld [vmem:[#allocation5 + $0x18] sm:$0xff]  ;;  %159 = vrot.lane.b32.xlu0 %v150_v0, %s402_s27  ;;  %108 = vrot.lane.b32.xlu1 %v150_v0, %s403_s2  ;;  %v154_v3 = vld [vmem:[#allocation5 + $0x28] sm:$0xff]  ;;  %s404_s28 = smov 80   ;;  %v153_v4 = vld [vmem:[#allocation5 + $0x20] sm:$0xff]  ;;  %vm66_vm0 = vcmask 130048   ;;  %s405_s29 = smov 32  }
  0x10   :  { %212 = vrot.lane.b32.xlu2 %v151_v1, %s404_s28  ;;  %130 = vmatpush.msra.mxu1 %v103_v2  ;;  %v102_v5 = vld [vmem:[#allocation5 + $0x10] sm:$0xff]  ;;  %v205_v6 = vld [vmem:[#allocation5 + $0x38] sm:$0xff]  ;;  %v63_v8 = vld [vmem:[#allocation5 + $0x8] sm:$0xff]  ;;  %s406_s30 = smov 64   ;;  %vm96_vm1 = vcmask 261120   ;;  %vm147_vm2 = vcmask 523520  }
  0x11   :  { %181 = vmatpush.msra.mxu2 %v154_v3  ;;  %v204_v7 = vld [vmem:[#allocation5 + $0x30] sm:$0xff]  ;;  %232 = vmatpush.msra.mxu3 %v205_v6  ;;  %v62_v9 = vld [vmem:[#allocation5] sm:$0xff]  ;;  %vm198_vm3 = vcmask 785920   ;;  %s407_s4 = smov [#allocation8]   ;;  %s258_s8 = sshll.u32 %s456_s3, 4  ;;  %vm249_vm4 = vcmask 1048320   ;;  %s259_s8 = int_to_ptr.hbm [resolvable:$true] %s258_s8 }
  0x12   :  { %131 = vmatpush.msra.mxu1 %v102_v5  ;;  %87 = vmatpush.msra.mxu0 %v63_v8  ;;  %v291_v16 = vld [vmem:[#allocation7 + $0x1] ss:$0 sm:$0xff]  ;;  %v292_v19 = vld [vmem:[#allocation7 + $0x2] ss:$0 sm:$0xff]  ;;  %v293_v24 = vld [vmem:[#allocation7 + $0x3] ss:$0 sm:$0xff] }
  0x13   :  { %182 = vmatpush.msra.mxu2 %v153_v4  ;;  %233 = vmatpush.msra.mxu3 %v204_v7  ;;  %v294_v31 = vld [vmem:[#allocation7] ss:$0 sm:$0xff]  ;;  %s256_s5 = sshll.u32 %s407_s4, 4  ;;  %s257_s5 = int_to_ptr.vmem [resolvable:$true] %s256_s5 }
  0x14   :  { %88 = vmatpush.msra.mxu0 %v62_v9 }
  0x15   :  { %272 = vmatmul.msk.f32.vlgmr.msra.gmra.mxu0 %vm66_vm0, %v150_v0 }
  0x17   :  { %210 = vrot.lane.b32.xlu0 %v150_v0, %s404_s28  ;;  %161 = vrot.lane.b32.xlu1 %v151_v1, %s402_s27 }
  0x18   :  { %110 = vrot.lane.b32.xlu2 %v151_v1, %s403_s2 }
  0x1d   :  { %273 = vmatmul.msk.f32.gmra.mxu0 %vm66_vm0, %v151_v1 }
  0x6a   :  { %v213_v10 = vpop.permute.xlu2 %212 }
  0x72   :  { %v111_v13 = vpop.permute.xlu2 %110 }
  0x81   :  { %v160_v11 = vpop.permute.xlu0 %159  ;;  %v109_v12 = vpop.permute.xlu1 %108 }
  0x82   :  { %274 = vmatmul.msk.f32.vlgmr.msra.gmra.mxu1 %vm66_vm0, %v109_v12  ;;  %276 = vmatmul.msk.f32.vlgmr.msra.gmra.mxu2 %vm66_vm0, %v160_v11 }
  0x89   :  { %v211_v14 = vpop.permute.xlu0 %210  ;;  %v162_v15 = vpop.permute.xlu1 %161 }
  0x8a   :  { %275 = vmatmul.msk.f32.gmra.mxu1 %vm66_vm0, %v111_v13  ;;  %277 = vmatmul.msk.f32.gmra.mxu2 %vm66_vm0, %v162_v15 }
  0x8b   :  { %278 = vmatmul.msk.f32.vlgmr.msra.gmra.mxu3 %vm66_vm0, %v211_v14 }
  0x92   :  { %v90_v32 = vpop.f32.mrf.mxu0 }
  0x93   :  { %279 = vmatmul.msk.f32.gmra.mxu3 %vm66_vm0, %v213_v10  ;;  %v91_v33 = vadd.f32 %v294_v31, %v90_v32 }
  0x95   :  { %97 = vst.msk [vmem:[#allocation8] sm:$0xff] %vm96_vm1, %v91_v33 }
  0x9a   :  { %v93_v34 = vpop.f32.mrf.mxu0 }
  0x9b   :  { %v94_v35 = vadd.f32 %v294_v31, %v93_v34 }
  0x9d   :  { %98 = vst.msk [vmem:[#allocation8 + $0x8] sm:$0xff] %vm96_vm1, %v94_v35 }
  0xff   :  { %v133_v17 = vpop.f32.mrf.mxu1 }
 0x100   :  { %v134_v18 = vadd.f32 %v291_v16, %v133_v17 }
 0x102   :  { %141 = vrot.lane.b32.xlu0 %v134_v18, %s405_s29 }
 0x105   :  { %v184_v20 = vpop.f32.mrf.mxu2 }
 0x106   :  { %v185_v21 = vadd.f32 %v292_v19, %v184_v20 }
 0x107   :  { %v136_v22 = vpop.f32.mrf.mxu1 }
 0x108   :  { %v137_v23 = vadd.f32 %v291_v16, %v136_v22  ;;  %192 = vrot.lane.b32.xlu2 %v185_v21, %s406_s30 }
 0x10a   :  { %143 = vrot.lane.b32.xlu1 %v137_v23, %s405_s29 }
 0x10d   :  { %v187_v25 = vpop.f32.mrf.mxu2 }
 0x10e   :  { %v188_v26 = vadd.f32 %v292_v19, %v187_v25  ;;  %v235_v27 = vpop.f32.mrf.mxu3 }
 0x10f   :  { %v236_v28 = vadd.f32 %v293_v24, %v235_v27 }
 0x110   :  { %194 = vrot.lane.b32.xlu0 %v188_v26, %s406_s30 }
 0x112   :  { %243 = vrot.lane.b32.xlu1 %v236_v28, %s402_s27 }
 0x116   :  { %v238_v29 = vpop.f32.mrf.mxu3 }
 0x117   :  { %v239_v30 = vadd.f32 %v293_v24, %v238_v29 }
 0x119   :  { %245 = vrot.lane.b32.xlu2 %v239_v30, %s402_s27 }
 0x162   :  { %v193_v37 = vpop.permute.xlu2 %192 }
 0x173   :  { %v246_v40 = vpop.permute.xlu2 %245 }
 0x174   :  { %v142_v36 = vpop.permute.xlu0 %141 }
 0x175   :  { %148 = vst.msk [vmem:[#allocation8] sm:$0xff] %vm147_vm2, %v142_v36 }
 0x176   :  { %199 = vst.msk [vmem:[#allocation8] sm:$0xff] %vm198_vm3, %v193_v37 }
 0x17c   :  { %v144_v38 = vpop.permute.xlu1 %143 }
 0x17d   :  { %149 = vst.msk [vmem:[#allocation8 + $0x8] sm:$0xff] %vm147_vm2, %v144_v38 }
 0x182   :  { %v195_v39 = vpop.permute.xlu0 %194 }
 0x183   :  { %200 = vst.msk [vmem:[#allocation8 + $0x8] sm:$0xff] %vm198_vm3, %v195_v39 }
 0x184   :  { %v244_v41 = vpop.permute.xlu1 %243  ;;  %251 = vst.msk [vmem:[#allocation8 + $0x8] sm:$0xff] %vm249_vm4, %v246_v40 }
 0x185   :  { %250 = vst.msk [vmem:[#allocation8] sm:$0xff] %vm249_vm4, %v244_v41 }
 0x186   :  { %264 = dma.vmem_to_hbm [thread:$0]  %s257_s5, 256, %s259_s8, [#allocation4], %s398_s20, %s398_s20, %s399_s21  }
 0x187   :  { %395 = dma.done.wait [#allocation4], 256  }
 0x188   :  { %396 = vsyncadd [#allocation4], 4294967040 }
 0x189   :  { %269 = vsyncpa [#allocation3], 1 }
 0x18a   :  { %270 = vsyncpa [#allocation6], 1 }
 0x18b   :  { %271 = vsyncpa [#allocation4], 1 }

</bundles_post_ra>
